<compile_context>
chip_gen: v7x
topology: tpu7x:2x2x1
jax: 0.10.0
libtpu: 0.0.40
codegen_flags: <defaults>
</compile_context>

<pallas_src>
import numpy as np
import jax
import jax.numpy as jnp
from jax.experimental import pallas as pl
from jax.experimental.pallas import tpu as pltpu


# ----------------------------- kernels --------------------------------------


def sin_norm_kernel(x_ref, u_ref, normx_ref, theta_ref):
    """One block of channels per grid step (channels in the lane axis).

    x_ref:     (b, l, C)      input slab, channel-last
    u_ref:     (tau, l, C)    basis, u[t, l, c] == U[c, l, t]
    normx_ref: (b, l, C)      x - reconstruction
    theta_ref: (tau*b, C)     projection coefficients, row t*b+bi == theta[t, bi]
    """
    tau = u_ref.shape[0]
    b = x_ref.shape[0]

    # NOTE: tau is tiny (<= ~8) -> static unroll; switch to
    # lax.fori_loop(..., unroll=True) if tau ever grows large.
    removed = jnp.zeros(x_ref.shape, jnp.float32)            # (b, l, C) f32 acc
    for t in range(tau):
        u_t = u_ref[t].astype(jnp.float32)                   # (l, C) per-t slice
        x = x_ref[...].astype(jnp.float32)                   # reload bounds liveness
        # theta[t, bi, c] = sum_l U[c, l, t] * x[bi, l, c]   (VPU mul + XLU reduce)
        th_t = jnp.sum(x * u_t[None, :, :], axis=1)          # (b, C)
        theta_ref[pl.ds(t * b, b), :] = th_t
        # removed[bi, l, c] += theta[t, bi, c] * U[c, l, t]
        removed = removed + th_t[:, None, :] * u_t[None, :, :]

    normx_ref[...] = (x_ref[...].astype(jnp.float32) - removed).astype(normx_ref.dtype)


def sin_denorm_kernel(ny_ref, vs_ref, theta_ref, y_ref):
    """One block of channels per grid step (channels in the lane axis).

    ny_ref:    (b, h, C)      normalized prediction, channel-last
    vs_ref:    (tau, h, C)    V with sqrt(h/seq_len) * affine_weight folded in
    theta_ref: (tau*b, C)     thetax from the 'norm' pass
    y_ref:     (b, h, C)      output
    """
    tau = vs_ref.shape[0]
    b = ny_ref.shape[0]

    acc = ny_ref[...].astype(jnp.float32)                    # (b, h, C)
    for t in range(tau):                                     # unrolled, VPU-only
        v_t = vs_ref[t].astype(jnp.float32)                  # (h, C)
        th_t = theta_ref[pl.ds(t * b, b), :].astype(jnp.float32)  # (b, C)
        # y[bi, h, c] += theta[t, bi, c] * V_scaled[c, h, t]
        acc = acc + th_t[:, None, :] * v_t[None, :, :]

    y_ref[...] = acc.astype(y_ref.dtype)


# ----------------------------- tiling helper ---------------------------------


def _channel_block(n, rows_per_channel, vmem_budget_bytes=12 * 1024 * 1024):
    """Pick a lane (channel) block size.

    rows_per_channel = number of f32 elements held in VMEM per channel per
    grid step (all streamed blocks combined, before double-buffering).
    """
    if n <= 128:
        # TODO(synk): n < 128 leaves (128 - n) lanes idle; a (b*n)-in-lanes
        # layout would be needed to reach hardware limits in that regime.
        return n
    # Double-buffered f32 bytes per channel column resident in VMEM per step.
    per_chan_bytes = 2 * rows_per_channel * 4
    cap = max(128, (vmem_budget_bytes // per_chan_bytes) // 128 * 128)
    # Force >= 2 grid steps so the "parallel" channel axis can shard across
    # the two TensorCores on v7x (harmless on single-TC v5e/v6e).
    half = (((n + 1) // 2) + 127) // 128 * 128
    return int(min(cap, half, 512))


# ----------------------------- wrappers --------------------------------------


def sin_norm(x, selected_U):
    """mode == 'norm'.

    x:          (b, seq_len, n)
    selected_U: (n, seq_len, tau)
    returns (norm_x (b, seq_len, n), thetax (tau, b, n) float32)  # matches PyTorch
    """
    b, l, n = x.shape
    tau = selected_U.shape[-1]

    rows = b * l + tau * l + b * l + tau * b        # x + U + norm_x + theta per channel
    c_blk = _channel_block(n, rows)
    grid = (pl.cdiv(n, c_blk),)

    # One-time, tiny re-layout of the basis: channels -> lanes, tau leading
    # (so u_ref[t] is a full unpadded (l, C) tile).
    # TODO(synk): if selected_U comes from a static basis bank, pre-transpose
    # the bank once outside the training/forward step instead of per call.
    u_tl = jnp.transpose(selected_U, (2, 1, 0)).astype(jnp.float32)   # (tau, l, n)

    norm_x, theta_2d = pl.pallas_call(
        sin_norm_kernel,
        grid=grid,
        in_specs=[
            pl.BlockSpec((b, l, c_blk), lambda c: (0, 0, c)),
            pl.BlockSpec((tau, l, c_blk), lambda c: (0, 0, c)),
        ],
        out_specs=[
            pl.BlockSpec((b, l, c_blk), lambda c: (0, 0, c)),
            pl.BlockSpec((tau * b, c_blk), lambda c: (0, c)),
        ],
        out_shape=(
            jax.ShapeDtypeStruct((b, l, n), x.dtype),
            jax.ShapeDtypeStruct((tau * b, n), jnp.float32),
        ),
        compiler_params=pltpu.CompilerParams(
            dimension_semantics=("parallel",)),
    )(x, u_tl)

    return norm_x, theta_2d.reshape(tau, b, n)      # free, row-major compatible


def sin_denorm(norm_y, thetax, selected_V, affine_weight, seq_len):
    """mode == 'denorm'.

    norm_y:        (b, pred_len, n)
    thetax:        (tau, b, n) float32   (from the 'norm' pass)
    selected_V:    (n, pred_len, tau)
    affine_weight: (tau,)
    returns y (b, pred_len, n)
    """
    b, h, n = norm_y.shape
    tau = selected_V.shape[-1]
    scale = float(np.sqrt(h / seq_len))

    rows = b * h + tau * h + tau * b + b * h        # ny + V + theta + y per channel
    c_blk = _channel_block(n, rows)
    grid = (pl.cdiv(n, c_blk),)

    # Fold sqrt(h/seq_len) and affine_weight into the (tiny) basis once:
    # vs[t, h, c] = scale * w[t] * V[c, h, t]
    vs = jnp.transpose(selected_V, (2, 1, 0)).astype(jnp.float32)     # (tau, h, n)
    vs = vs * (scale * affine_weight.astype(jnp.float32))[:, None, None]

    theta_2d = thetax.reshape(tau * b, n).astype(jnp.float32)         # free reshape

    y = pl.pallas_call(
        sin_denorm_kernel,
        grid=grid,
        in_specs=[
            pl.BlockSpec((b, h, c_blk), lambda c: (0, 0, c)),
            pl.BlockSpec((tau, h, c_blk), lambda c: (0, 0, c)),
            pl.BlockSpec((tau * b, c_blk), lambda c: (0, c)),
        ],
        out_specs=pl.BlockSpec((b, h, c_blk), lambda c: (0, 0, c)),
        out_shape=jax.ShapeDtypeStruct((b, h, n), norm_y.dtype),
        compiler_params=pltpu.CompilerParams(
            dimension_semantics=("parallel",)),
    )(norm_y, vs, theta_2d)

    return y


# ----------------------------- reference (pure JAX) --------------------------


def ref_norm(x, U):
    # x: (b, l, n), U: (n, l, tau)
    Ut = jnp.transpose(U, (2, 1, 0))                                   # (tau, l, n)
    theta = jnp.einsum("tlc,blc->tbc", Ut, x.astype(jnp.float32))      # (tau, b, n)
    removed = jnp.einsum("tlc,tbc->blc", Ut, theta)
    return (x.astype(jnp.float32) - removed).astype(x.dtype), theta


def ref_denorm(ny, theta, V, w, seq_len):
    b, h, n = ny.shape
    thetay = theta * w[:, None, None]
    Vt = jnp.transpose(V, (2, 1, 0))                                   # (tau, h, n)
    restore = jnp.einsum("thc,tbc->bhc", Vt, thetay)
    return (ny.astype(jnp.float32) + np.sqrt(h / seq_len) * restore).astype(ny.dtype)


# ----------------------------- checks -----------------------------------------


def _run_and_check(b, seq_len, pred_len, enc_in, tau, seed):
    key = jax.random.PRNGKey(seed)
    k1, k2, k3, k4, k5 = jax.random.split(key, 5)

    x = jax.random.normal(k1, (b, seq_len, enc_in), dtype=jnp.float32)
    norm_y_in = jax.random.normal(k2, (b, pred_len, enc_in), dtype=jnp.float32)
    selected_U = jax.random.normal(k3, (enc_in, seq_len, tau), dtype=jnp.float32)
    selected_V = jax.random.normal(k4, (enc_in, pred_len, tau), dtype=jnp.float32)
    affine_weight = jnp.ones((tau,), dtype=jnp.float32) + 0.01 * jax.random.normal(
        k5, (tau,), dtype=jnp.float32)

    # mode == 'norm'
    norm_x, thetax = sin_norm(x, selected_U)
    norm_x = jax.block_until_ready(norm_x)
    thetax = jax.block_until_ready(thetax)

    # mode == 'denorm' (uses thetax from the norm pass, as in the module)
    y = sin_denorm(norm_y_in, thetax, selected_V, affine_weight, seq_len)
    y = jax.block_until_ready(y)

    nx_ref, th_ref = ref_norm(x, selected_U)
    y_ref = ref_denorm(norm_y_in, th_ref, selected_V, affine_weight, seq_len)

    assert np.allclose(np.asarray(norm_x), np.asarray(nx_ref), rtol=1e-3, atol=1e-3)
    assert np.allclose(np.asarray(thetax), np.asarray(th_ref), rtol=1e-3, atol=1e-3)
    assert np.allclose(np.asarray(y), np.asarray(y_ref), rtol=1e-3, atol=1e-3)


if __name__ == "__main__":
    # Small config matching the PyTorch module conventions (single block, n < 128).
    _run_and_check(b=2, seq_len=16, pred_len=8, enc_in=4, tau=4, seed=0)
    # Moderate config exercising the multi-block, lane-dense path (n > 128,
    # ragged last channel block).
    _run_and_check(b=2, seq_len=16, pred_len=8, enc_in=384, tau=4, seed=0)

    print("KERNEL_OK")
</pallas_src>

<mosaic_0001>
module attributes {stable_mosaic.version = 11 : i64} {
  func.func @sin_norm_kernel(%arg0: i32, %arg1: memref<2x16x4xf32, #tpu.memory_space<vmem>>, %arg2: memref<4x16x4xf32, #tpu.memory_space<vmem>>, %arg3: memref<2x16x4xf32, #tpu.memory_space<vmem>>, %arg4: memref<8x4xf32, #tpu.memory_space<vmem>>) attributes {dimension_semantics = [#tpu.dimension_semantics<parallel>], iteration_bounds = array<i64: 1>, scalar_prefetch = 0 : i64, scratch_operands = 0 : i64, tpu.core_type = #tpu.core_type<tc>, window_params = [{transform_indices = @transform_0, window_bounds = array<i64: 2, 16, 4>}, {transform_indices = @transform_1, window_bounds = array<i64: 4, 16, 4>}, {transform_indices = @transform_2, window_bounds = array<i64: 2, 16, 4>}, {transform_indices = @transform_3, window_bounds = array<i64: 8, 4>}]} {
    %cst = arith.constant 0.000000e+00 : f32
    %0 = vector.broadcast %cst : f32 to vector<2x16x4xf32>
    %c0 = arith.constant 0 : index
    %c0_0 = arith.constant 0 : index
    %c0_1 = arith.constant 0 : index
    %1 = vector.load %arg2[%c0, %c0_0, %c0_1] : memref<4x16x4xf32, #tpu.memory_space<vmem>>, vector<1x16x4xf32>
    %2 = vector.shape_cast %1 : vector<1x16x4xf32> to vector<16x4xf32>
    %c0_2 = arith.constant 0 : index
    %c0_3 = arith.constant 0 : index
    %c0_4 = arith.constant 0 : index
    %3 = vector.load %arg1[%c0_2, %c0_3, %c0_4] : memref<2x16x4xf32, #tpu.memory_space<vmem>>, vector<2x16x4xf32>
    %4 = vector.shape_cast %2 : vector<16x4xf32> to vector<1x16x4xf32>
    %5 = vector.broadcast %4 : vector<1x16x4xf32> to vector<2x16x4xf32>
    %6 = arith.mulf %3, %5 : vector<2x16x4xf32>
    %cst_5 = arith.constant dense<0.000000e+00> : vector<2x4xf32>
    %7 = vector.multi_reduction <add>, %6, %cst_5 [1] : vector<2x16x4xf32> to vector<2x4xf32>
    %c0_6 = arith.constant 0 : index
    %c0_7 = arith.constant 0 : index
    %8 = vector.load %arg4[%c0_6, %c0_7] : memref<8x4xf32, #tpu.memory_space<vmem>>, vector<2x4xf32>
    tpu.vector_store %arg4[%c0_6, %c0_7], %7 {strides = array<i32>} : memref<8x4xf32, #tpu.memory_space<vmem>>, vector<2x4xf32>,
    %9 = vector.shape_cast %7 : vector<2x4xf32> to vector<2x1x4xf32>
    %10 = vector.shape_cast %2 : vector<16x4xf32> to vector<1x16x4xf32>
    %11 = vector.broadcast %9 : vector<2x1x4xf32> to vector<2x16x4xf32>
    %12 = vector.broadcast %10 : vector<1x16x4xf32> to vector<2x16x4xf32>
    %13 = arith.mulf %11, %12 : vector<2x16x4xf32>
    %14 = arith.addf %0, %13 : vector<2x16x4xf32>
    %c1 = arith.constant 1 : index
    %c0_8 = arith.constant 0 : index
    %c0_9 = arith.constant 0 : index
    %15 = vector.load %arg2[%c1, %c0_8, %c0_9] : memref<4x16x4xf32, #tpu.memory_space<vmem>>, vector<1x16x4xf32>
    %16 = vector.shape_cast %15 : vector<1x16x4xf32> to vector<16x4xf32>
    %c0_10 = arith.constant 0 : index
    %c0_11 = arith.constant 0 : index
    %c0_12 = arith.constant 0 : index
    %17 = vector.load %arg1[%c0_10, %c0_11, %c0_12] : memref<2x16x4xf32, #tpu.memory_space<vmem>>, vector<2x16x4xf32>
    %18 = vector.shape_cast %16 : vector<16x4xf32> to vector<1x16x4xf32>
    %19 = vector.broadcast %18 : vector<1x16x4xf32> to vector<2x16x4xf32>
    %20 = arith.mulf %17, %19 : vector<2x16x4xf32>
    %cst_13 = arith.constant dense<0.000000e+00> : vector<2x4xf32>
    %21 = vector.multi_reduction <add>, %20, %cst_13 [1] : vector<2x16x4xf32> to vector<2x4xf32>
    %c2 = arith.constant 2 : index
    %c0_14 = arith.constant 0 : index
    %22 = vector.load %arg4[%c2, %c0_14] : memref<8x4xf32, #tpu.memory_space<vmem>>, vector<2x4xf32>
    tpu.vector_store %arg4[%c2, %c0_14], %21 {strides = array<i32>} : memref<8x4xf32, #tpu.memory_space<vmem>>, vector<2x4xf32>,
    %23 = vector.shape_cast %21 : vector<2x4xf32> to vector<2x1x4xf32>
    %24 = vector.shape_cast %16 : vector<16x4xf32> to vector<1x16x4xf32>
    %25 = vector.broadcast %23 : vector<2x1x4xf32> to vector<2x16x4xf32>
    %26 = vector.broadcast %24 : vector<1x16x4xf32> to vector<2x16x4xf32>
    %27 = arith.mulf %25, %26 : vector<2x16x4xf32>
    %28 = arith.addf %14, %27 : vector<2x16x4xf32>
    %c2_15 = arith.constant 2 : index
    %c0_16 = arith.constant 0 : index
    %c0_17 = arith.constant 0 : index
    %29 = vector.load %arg2[%c2_15, %c0_16, %c0_17] : memref<4x16x4xf32, #tpu.memory_space<vmem>>, vector<1x16x4xf32>
    %30 = vector.shape_cast %29 : vector<1x16x4xf32> to vector<16x4xf32>
    %c0_18 = arith.constant 0 : index
    %c0_19 = arith.constant 0 : index
    %c0_20 = arith.constant 0 : index
    %31 = vector.load %arg1[%c0_18, %c0_19, %c0_20] : memref<2x16x4xf32, #tpu.memory_space<vmem>>, vector<2x16x4xf32>
    %32 = vector.shape_cast %30 : vector<16x4xf32> to vector<1x16x4xf32>
    %33 = vector.broadcast %32 : vector<1x16x4xf32> to vector<2x16x4xf32>
    %34 = arith.mulf %31, %33 : vector<2x16x4xf32>
    %cst_21 = arith.constant dense<0.000000e+00> : vector<2x4xf32>
    %35 = vector.multi_reduction <add>, %34, %cst_21 [1] : vector<2x16x4xf32> to vector<2x4xf32>
    %c4 = arith.constant 4 : index
    %c0_22 = arith.constant 0 : index
    %36 = vector.load %arg4[%c4, %c0_22] : memref<8x4xf32, #tpu.memory_space<vmem>>, vector<2x4xf32>
    tpu.vector_store %arg4[%c4, %c0_22], %35 {strides = array<i32>} : memref<8x4xf32, #tpu.memory_space<vmem>>, vector<2x4xf32>,
    %37 = vector.shape_cast %35 : vector<2x4xf32> to vector<2x1x4xf32>
    %38 = vector.shape_cast %30 : vector<16x4xf32> to vector<1x16x4xf32>
    %39 = vector.broadcast %37 : vector<2x1x4xf32> to vector<2x16x4xf32>
    %40 = vector.broadcast %38 : vector<1x16x4xf32> to vector<2x16x4xf32>
    %41 = arith.mulf %39, %40 : vector<2x16x4xf32>
    %42 = arith.addf %28, %41 : vector<2x16x4xf32>
    %c3 = arith.constant 3 : index
    %c0_23 = arith.constant 0 : index
    %c0_24 = arith.constant 0 : index
    %43 = vector.load %arg2[%c3, %c0_23, %c0_24] : memref<4x16x4xf32, #tpu.memory_space<vmem>>, vector<1x16x4xf32>
    %44 = vector.shape_cast %43 : vector<1x16x4xf32> to vector<16x4xf32>
    %c0_25 = arith.constant 0 : index
    %c0_26 = arith.constant 0 : index
    %c0_27 = arith.constant 0 : index
    %45 = vector.load %arg1[%c0_25, %c0_26, %c0_27] : memref<2x16x4xf32, #tpu.memory_space<vmem>>, vector<2x16x4xf32>
    %46 = vector.shape_cast %44 : vector<16x4xf32> to vector<1x16x4xf32>
    %47 = vector.broadcast %46 : vector<1x16x4xf32> to vector<2x16x4xf32>
    %48 = arith.mulf %45, %47 : vector<2x16x4xf32>
    %cst_28 = arith.constant dense<0.000000e+00> : vector<2x4xf32>
    %49 = vector.multi_reduction <add>, %48, %cst_28 [1] : vector<2x16x4xf32> to vector<2x4xf32>
    %c6 = arith.constant 6 : index
    %c0_29 = arith.constant 0 : index
    %50 = vector.load %arg4[%c6, %c0_29] : memref<8x4xf32, #tpu.memory_space<vmem>>, vector<2x4xf32>
    tpu.vector_store %arg4[%c6, %c0_29], %49 {strides = array<i32>} : memref<8x4xf32, #tpu.memory_space<vmem>>, vector<2x4xf32>,
    %51 = vector.shape_cast %49 : vector<2x4xf32> to vector<2x1x4xf32>
    %52 = vector.shape_cast %44 : vector<16x4xf32> to vector<1x16x4xf32>
    %53 = vector.broadcast %51 : vector<2x1x4xf32> to vector<2x16x4xf32>
    %54 = vector.broadcast %52 : vector<1x16x4xf32> to vector<2x16x4xf32>
    %55 = arith.mulf %53, %54 : vector<2x16x4xf32>
    %56 = arith.addf %42, %55 : vector<2x16x4xf32>
    %c0_30 = arith.constant 0 : index
    %c0_31 = arith.constant 0 : index
    %c0_32 = arith.constant 0 : index
    %57 = vector.load %arg1[%c0_30, %c0_31, %c0_32] : memref<2x16x4xf32, #tpu.memory_space<vmem>>, vector<2x16x4xf32>
    %58 = arith.subf %57, %56 : vector<2x16x4xf32>
    %c0_33 = arith.constant 0 : index
    %c0_34 = arith.constant 0 : index
    %c0_35 = arith.constant 0 : index
    %59 = vector.load %arg3[%c0_33, %c0_34, %c0_35] : memref<2x16x4xf32, #tpu.memory_space<vmem>>, vector<2x16x4xf32>
    tpu.vector_store %arg3[%c0_33, %c0_34, %c0_35], %58 {strides = array<i32>} : memref<2x16x4xf32, #tpu.memory_space<vmem>>, vector<2x16x4xf32>,
    return
  }
  func.func @transform_0(%arg0: i32) -> (i32, i32, i32) {
    %c0_i32 = arith.constant 0 : i32
    %c0_i32_0 = arith.constant 0 : i32
    %c0_i32_1 = arith.constant 0 : i32
    return %c0_i32, %c0_i32_0, %arg0 : i32, i32, i32
  }
  func.func @transform_1(%arg0: i32) -> (i32, i32, i32) {
    %c0_i32 = arith.constant 0 : i32
    %c0_i32_0 = arith.constant 0 : i32
    %c0_i32_1 = arith.constant 0 : i32
    return %c0_i32, %c0_i32_0, %arg0 : i32, i32, i32
  }
  func.func @transform_2(%arg0: i32) -> (i32, i32, i32) {
    %c0_i32 = arith.constant 0 : i32
    %c0_i32_0 = arith.constant 0 : i32
    %c0_i32_1 = arith.constant 0 : i32
    return %c0_i32, %c0_i32_0, %arg0 : i32, i32, i32
  }
  func.func @transform_3(%arg0: i32) -> (i32, i32) {
    %c0_i32 = arith.constant 0 : i32
    %c0_i32_0 = arith.constant 0 : i32
    return %c0_i32, %arg0 : i32, i32
  }
}

</mosaic_0001>

<bundles_post_ra>
// kernel: tpu_custom_call.1
= control target key start
LH: loop header
LB: loop body
LE: loop exit
PB: predicated region body
PF: predicated region fallthrough
CT: control target
= control target key end

     0   :  { %vm23_vm0 = vcmask 31744   ;;  %vm44_vm1 = vcmask 1041409   ;;  %vm47_vm2 = vcmask 25600   ;;  %s393_s0 = inlined_call_operand.vmem [shape: f32[2,16,4], index: 0, kind: input, shape index: {}]   ;;  %s394_s1 = inlined_call_operand.vmem [shape: f32[4,16,4], index: 1, kind: input, shape index: {}]   ;;  %s395_s3 = inlined_call_operand.vmem [shape: f32[8,4], index: 3, kind: output, shape index: {1}]   ;;  %s396_s2 = inlined_call_operand.vmem [shape: f32[2,16,4], index: 2, kind: output, shape index: {0}]  }
   0x1   :  { %v232_v0 = vld [vmem:[%s394_s1] sm:$0xff]  ;;  %v237_v1 = vld [vmem:[%s394_s1 + $0x8] sm:$0xff]  ;;  %v252_v4 = vld [vmem:[%s393_s0 + $0x10] sm:$0xff] }
   0x2   :  { %v242_v2 = vld [vmem:[%s393_s0] sm:$0xff]  ;;  %v247_v3 = vld [vmem:[%s393_s0 + $0x8] sm:$0xff]  ;;  %v257_v5 = vld [vmem:[%s393_s0 + $0x18] sm:$0xff]  ;;  %v21_v8 = vmul.f32 %v252_v4, %v232_v0 }
   0x3   :  { %v19_v6 = vmul.f32 %v242_v2, %v232_v0  ;;  %v20_v7 = vmul.f32 %v247_v3, %v237_v1  ;;  %v22_v9 = vmul.f32 %v257_v5, %v237_v1  ;;  %v270_v10 = vld [vmem:[%s394_s1 + $0x10] sm:$0xff]  ;;  %v275_v11 = vld [vmem:[%s394_s1 + $0x18] sm:$0xff]  ;;  %v287_v16 = vld [vmem:[%s394_s1 + $0x20] sm:$0xff] }
   0x4   :  { %v64_v13 = vmul.f32 %v270_v10, %v242_v2  ;;  %v65_v14 = vmul.f32 %v275_v11, %v247_v3  ;;  %v66_v15 = vmul.f32 %v270_v10, %v252_v4  ;;  %v33_v18 = vsel %vm23_vm0, %v21_v8, 0.0  ;;  %v297_v21 = vld [vmem:[%s394_s1 + $0x28] sm:$0xff]  ;;  %v316_v42 = vld [vmem:[%s394_s1 + $0x30] sm:$0xff]  ;;  %v321_v43 = vld [vmem:[%s394_s1 + $0x38] sm:$0xff] }
   0x5   :  { %v24_v12 = vsel %vm23_vm0, %v19_v6, 0.0  ;;  %v25_v17 = vsel %vm23_vm0, %v20_v7, 0.0  ;;  %v34_v19 = vsel %vm23_vm0, %v22_v9, 0.0  ;;  %v67_v20 = vmul.f32 %v275_v11, %v257_v5 }
   0x6   :  { %v26_v22 = vadd.f32 %v25_v17, %v24_v12  ;;  %v35_v23 = vadd.f32 %v34_v19, %v33_v18  ;;  %v68_v24 = vsel %vm23_vm0, %v64_v13, 0.0  ;;  %v69_v25 = vsel %vm23_vm0, %v65_v14, 0.0 }
   0x7   :  { %v70_v26 = vadd.f32 %v69_v25, %v68_v24  ;;  %v77_v27 = vsel %vm23_vm0, %v66_v15, 0.0  ;;  %v78_v28 = vsel %vm23_vm0, %v67_v20, 0.0  ;;  %v106_v29 = vmul.f32 %v287_v16, %v242_v2 }
   0x8   :  { %v27_v30 = vrot.slane %v26_v22, 4  ;;  %v36_v31 = vrot.slane %v35_v23, 4  ;;  %v79_v32 = vadd.f32 %v78_v28, %v77_v27  ;;  %v107_v33 = vmul.f32 %v297_v21, %v247_v3 }
   0x9   :  { %v71_v34 = vrot.slane %v70_v26, 4  ;;  %v108_v35 = vmul.f32 %v287_v16, %v252_v4  ;;  %v109_v36 = vmul.f32 %v297_v21, %v257_v5  ;;  %v110_v37 = vsel %vm23_vm0, %v106_v29, 0.0 }
   0xa   :  { %v28_v38 = vadd.f32 %v27_v30, %v26_v22  ;;  %v37_v39 = vadd.f32 %v36_v31, %v35_v23  ;;  %v80_v40 = vrot.slane %v79_v32, 4  ;;  %v111_v41 = vsel %vm23_vm0, %v107_v33, 0.0 }
   0xb   :  { %v72_v44 = vadd.f32 %v71_v34, %v70_v26  ;;  %v112_v45 = vadd.f32 %v111_v41, %v110_v37  ;;  %v119_v46 = vsel %vm23_vm0, %v108_v35, 0.0  ;;  %v120_v47 = vsel %vm23_vm0, %v109_v36, 0.0 }
   0xc   :  { %v29_v48 = vrot.slane %v28_v38, 2  ;;  %v38_v49 = vrot.slane %v37_v39, 2  ;;  %v81_v50 = vadd.f32 %v80_v40, %v79_v32  ;;  %v121_v51 = vadd.f32 %v120_v47, %v119_v46 }
   0xd   :  { %v73_v52 = vrot.slane %v72_v44, 2  ;;  %v113_v53 = vrot.slane %v112_v45, 4  ;;  %v148_v54 = vmul.f32 %v316_v42, %v242_v2  ;;  %v149_v55 = vmul.f32 %v321_v43, %v247_v3 }
   0xe   :  { %v30_v56 = vadd.f32 %v29_v48, %v28_v38  ;;  %v39_v57 = vadd.f32 %v38_v49, %v37_v39  ;;  %v82_v58 = vrot.slane %v81_v50, 2  ;;  %v122_v59 = vrot.slane %v121_v51, 4 }
   0xf   :  { %v74_v60 = vadd.f32 %v73_v52, %v72_v44  ;;  %v114_v61 = vadd.f32 %v113_v53, %v112_v45  ;;  %v150_v62 = vmul.f32 %v316_v42, %v252_v4  ;;  %v151_v63 = vmul.f32 %v321_v43, %v257_v5 }
  0x10   :  { %v31_v6 = vrot.slane %v30_v56, 1  ;;  %v40_v7 = vrot.slane %v39_v57, 1  ;;  %v83_v8 = vadd.f32 %v82_v58, %v81_v50  ;;  %v123_v9 = vadd.f32 %v122_v59, %v121_v51 }
  0x11   :  { %v75_v12 = vrot.slane %v74_v60, 1  ;;  %v115_v13 = vrot.slane %v114_v61, 2  ;;  %v152_v14 = vsel %vm23_vm0, %v148_v54, 0.0  ;;  %v153_v15 = vsel %vm23_vm0, %v149_v55, 0.0 }
  0x12   :  { %v32_v17 = vadd.f32 %v31_v6, %v30_v56  ;;  %v41_v18 = vadd.f32 %v40_v7, %v39_v57  ;;  %v84_v19 = vrot.slane %v83_v8, 1  ;;  %v124_v20 = vrot.slane %v123_v9, 2 }
  0x13   :  { %v76_v22 = vadd.f32 %v75_v12, %v74_v60  ;;  %v116_v23 = vadd.f32 %v115_v13, %v114_v61  ;;  %v154_v24 = vadd.f32 %v153_v15, %v152_v14  ;;  %v161_v26 = vsel %vm23_vm0, %v150_v62, 0.0 }
  0x14   :  { %v45_v25 = vsel %vm44_vm1, %v41_v18, %v32_v17  ;;  %v49_v27 = vmul.f32 %v32_v17, %v232_v0  ;;  %v50_v28 = vmul.f32 %v32_v17, %v237_v1  ;;  %v85_v29 = vadd.f32 %v84_v19, %v83_v8 }
  0x15   :  { %48 = vst.msk [vmem:[%s395_s3] sm:$0x3] %vm47_vm2, %v45_v25  ;;  %v117_v30 = vrot.slane %v116_v23, 1  ;;  %v125_v31 = vadd.f32 %v124_v20, %v123_v9  ;;  %v155_v32 = vrot.slane %v154_v24, 4  ;;  %v162_v33 = vsel %vm23_vm0, %v151_v63, 0.0 }
  0x16   :  { %v88_v34 = vsel %vm44_vm1, %v85_v29, %v76_v22  ;;  %v91_v35 = vmul.f32 %v270_v10, %v76_v22  ;;  %v92_v36 = vmul.f32 %v275_v11, %v76_v22  ;;  %v163_v37 = vadd.f32 %v162_v33, %v161_v26 }
  0x17   :  { %90 = vst.msk [vmem:[%s395_s3 + $0x2] sm:$0x3] %vm47_vm2, %v88_v34  ;;  %v118_v38 = vadd.f32 %v117_v30, %v116_v23  ;;  %v126_v39 = vrot.slane %v125_v31, 1  ;;  %v156_v40 = vadd.f32 %v155_v32, %v154_v24  ;;  %v51_v41 = vmul.f32 %v41_v18, %v232_v0 }
  0x18   :  { %v164_v44 = vrot.slane %v163_v37, 4  ;;  %v52_v45 = vmul.f32 %v41_v18, %v237_v1  ;;  %v93_v46 = vmul.f32 %v270_v10, %v85_v29  ;;  %v94_v49 = vmul.f32 %v275_v11, %v85_v29 }
  0x19   :  { %v127_v47 = vadd.f32 %v126_v39, %v125_v31  ;;  %v157_v48 = vrot.slane %v156_v40, 2  ;;  %v95_v51 = vadd.f32 %v91_v35, %v49_v27  ;;  %v96_v52 = vadd.f32 %v92_v36, %v50_v28 }
  0x1a   :  { %v165_v50 = vadd.f32 %v164_v44, %v163_v37  ;;  %v133_v55 = vmul.f32 %v287_v16, %v118_v38  ;;  %v134_v56 = vmul.f32 %v297_v21, %v118_v38  ;;  %v97_v10 = vadd.f32 %v93_v46, %v51_v41 }
  0x1b   :  { %v130_v53 = vsel %vm44_vm1, %v127_v47, %v118_v38  ;;  %v158_v54 = vadd.f32 %v157_v48, %v156_v40  ;;  %v135_v11 = vmul.f32 %v287_v16, %v127_v47  ;;  %v98_v58 = vadd.f32 %v94_v49, %v52_v45 }
  0x1c   :  { %132 = vst.msk [vmem:[%s395_s3 + $0x4] sm:$0x3] %vm47_vm2, %v130_v53  ;;  %v166_v0 = vrot.slane %v165_v50, 2  ;;  %v136_v59 = vmul.f32 %v297_v21, %v127_v47  ;;  %v137_v61 = vadd.f32 %v133_v55, %v95_v51  ;;  %v138_v62 = vadd.f32 %v134_v56, %v96_v52 }
  0x1d   :  { %v159_v1 = vrot.slane %v158_v54, 1  ;;  %v139_v9 = vadd.f32 %v135_v11, %v97_v10 }
  0x1e   :  { %v167_v57 = vadd.f32 %v166_v0, %v165_v50  ;;  %v140_v12 = vadd.f32 %v136_v59, %v98_v58 }
  0x1f   :  { %v160_v60 = vadd.f32 %v159_v1, %v158_v54 }
  0x20   :  { %v168_v63 = vrot.slane %v167_v57, 1 }
  0x21   :  { %v175_v6 = vmul.f32 %v316_v42, %v160_v60  ;;  %v176_v7 = vmul.f32 %v321_v43, %v160_v60 }
  0x22   :  { %v169_v8 = vadd.f32 %v168_v63, %v167_v57 }
  0x23   :  { %v179_v13 = vadd.f32 %v175_v6, %v137_v61  ;;  %v180_v14 = vadd.f32 %v176_v7, %v138_v62 }
  0x24   :  { %v172_v15 = vsel %vm44_vm1, %v169_v8, %v160_v60  ;;  %v177_v16 = vmul.f32 %v316_v42, %v169_v8  ;;  %v178_v17 = vmul.f32 %v321_v43, %v169_v8 }
  0x25   :  { %174 = vst.msk [vmem:[%s395_s3 + $0x6] sm:$0x3] %vm47_vm2, %v172_v15  ;;  %v187_v21 = vsub.f32 %v242_v2, %v179_v13  ;;  %v188_v18 = vsub.f32 %v247_v3, %v180_v14 }
  0x26   :  { %v181_v19 = vadd.f32 %v177_v16, %v139_v9  ;;  %v182_v20 = vadd.f32 %v178_v17, %v140_v12 }
  0x27   :  { %191 = vst.msk [vmem:[%s396_s2] sm:$0xff] %vm23_vm0, %v187_v21  ;;  %192 = vst.msk [vmem:[%s396_s2 + $0x8] sm:$0xff] %vm23_vm0, %v188_v18 }
  0x28   :  { %v189_v42 = vsub.f32 %v252_v4, %v181_v19  ;;  %v190_v43 = vsub.f32 %v257_v5, %v182_v20 }
  0x2a   :  { %193 = vst.msk [vmem:[%s396_s2 + $0x10] sm:$0xff] %vm23_vm0, %v189_v42  ;;  %194 = vst.msk [vmem:[%s396_s2 + $0x18] sm:$0xff] %vm23_vm0, %v190_v43 }

</bundles_post_ra>
